<compile_context>
chip_gen: v5e
topology: v5e:2x2
jax: 0.10.0
libtpu: 0.0.40
codegen_flags: <defaults>
</compile_context>

<pallas_src>
import functools

import jax
import jax.numpy as jnp
from jax.experimental import pallas as pl
from jax.experimental.pallas import tpu as pltpu

LANE = 128


def _round_up(v, m):
    return ((v + m - 1) // m) * m


# ----------------------------- fused Pallas kernel ------------------------------

def _fused_mlp_kernel(*refs, num_layers):
    # refs layout: x, (w0, b0), (w1, b1), ..., (w_{L-1}, b_{L-1}), alpha, out
    x_ref = refs[0]
    alpha_ref = refs[1 + 2 * num_layers]     # (1, 1) in SMEM
    o_ref = refs[2 + 2 * num_layers]

    alpha = alpha_ref[0, 0]
    h = x_ref[...].astype(jnp.float32)
    for i in range(num_layers):
        w_ref = refs[1 + 2 * i]
        b_ref = refs[2 + 2 * i]
        h = jnp.dot(h, w_ref[...], preferred_element_type=jnp.float32)
        h = h + b_ref[...]
        if i < num_layers - 1:
            h = jnp.where(h >= 0.0, h, alpha * h)   # PReLU (single shared alpha)
            # dropout: identity in eval mode
    o_ref[...] = h.astype(o_ref.dtype)


@functools.partial(jax.jit, static_argnames=("tile_m",))
def _mlp_forward_jit(x, weights, biases, prelu_alpha, *, tile_m):
    num_layers = len(weights)
    n, feat_dim = x.shape
    out_dim = weights[-1].shape[1]

    # --- lane-dense padding: all dims -> multiples of 128, rows -> tile_m -----
    dims = [feat_dim] + [w.shape[1] for w in weights]
    pdims = [_round_up(d, LANE) for d in dims]
    n_pad = _round_up(n, tile_m)

    x_p = jnp.zeros((n_pad, pdims[0]), jnp.float32).at[:n, :feat_dim].set(
        x.astype(jnp.float32))

    ws_p, bs_p = [], []
    for i, (w, b) in enumerate(zip(weights, biases)):
        wp = jnp.zeros((pdims[i], pdims[i + 1]), jnp.float32)
        wp = wp.at[:w.shape[0], :w.shape[1]].set(w.astype(jnp.float32))
        bp = jnp.zeros((1, pdims[i + 1]), jnp.float32).at[0, :b.shape[0]].set(
            b.astype(jnp.float32))
        ws_p.append(wp)
        bs_p.append(bp)

    alpha2 = jnp.asarray(prelu_alpha, jnp.float32).reshape(1, 1)

    # --- BlockSpecs ------------------------------------------------------------
    in_specs = [pl.BlockSpec((tile_m, pdims[0]), lambda i: (i, 0))]
    for li in range(num_layers):
        in_specs.append(
            pl.BlockSpec((pdims[li], pdims[li + 1]), lambda i: (0, 0)))
        in_specs.append(pl.BlockSpec((1, pdims[li + 1]), lambda i: (0, 0)))
    in_specs.append(
        pl.BlockSpec((1, 1), lambda i: (0, 0),
                     memory_space=pltpu.MemorySpace.SMEM))

    out_spec = pl.BlockSpec((tile_m, pdims[-1]), lambda i: (i, 0))

    kernel = functools.partial(_fused_mlp_kernel, num_layers=num_layers)

    out_p = pl.pallas_call(
        kernel,
        out_shape=jax.ShapeDtypeStruct((n_pad, pdims[-1]), jnp.float32),
        grid_spec=pltpu.PrefetchScalarGridSpec(
            num_scalar_prefetch=0,
            grid=(n_pad // tile_m,),
            in_specs=in_specs,
            out_specs=out_spec,
        ),
        compiler_params=pltpu.CompilerParams(
            dimension_semantics=("parallel",)),
    )(x_p, *[t for pair in zip(ws_p, bs_p) for t in pair], alpha2)

    return out_p[:n, :out_dim]


def mlp_forward(x, weights, biases, prelu_alpha, *, tile_m=128):
    """Fused MLP forward: one pallas_call for all layers."""
    if len(weights) < 2:
        raise ValueError('MLP must have at least two layers!')
    return _mlp_forward_jit(x, tuple(weights), tuple(biases), prelu_alpha,
                            tile_m=tile_m)


# --------------------------- parameter construction ------------------------

def xavier_uniform(key, in_dim, out_dim, gain):
    # torch.nn.init.xavier_uniform_ : U(-a, a), a = gain * sqrt(6/(fan_in+fan_out))
    bound = gain * (6.0 / (in_dim + out_dim)) ** 0.5
    return jax.random.uniform(key, (in_dim, out_dim), jnp.float32,
                              minval=-bound, maxval=bound)


def init_mlp_params(key, feat_dim, hidden_dim, output_dim, num_layers):
    gain = 2.0 ** 0.5  # calculate_gain('relu')
    dims = [feat_dim] + [hidden_dim] * (num_layers - 1) + [output_dim]
    weights, biases = [], []
    keys = jax.random.split(key, num_layers)
    for i in range(num_layers):
        weights.append(xavier_uniform(keys[i], dims[i], dims[i + 1], gain))
        biases.append(jnp.zeros((dims[i + 1],), jnp.float32))
    prelu_alpha = jnp.float32(0.25)  # nn.PReLU() default init
    return weights, biases, prelu_alpha


# ----------------------------------- main -----------------------------------

if __name__ == "__main__":
    N = 256          # number of nodes
    FEAT_DIM = 32
    HIDDEN_DIM = 32
    OUTPUT_DIM = 16
    NUM_LAYERS = 3

    key = jax.random.PRNGKey(0)
    k_x, k_p = jax.random.split(key)
    x = jax.random.normal(k_x, (N, FEAT_DIM), jnp.float32)

    weights, biases, alpha = init_mlp_params(
        k_p, FEAT_DIM, HIDDEN_DIM, OUTPUT_DIM, NUM_LAYERS)

    out = mlp_forward(x, weights, biases, alpha)
    out = jax.block_until_ready(out)

    # sanity check against plain-JAX reference
    ref = x
    for i in range(NUM_LAYERS - 1):
        ref = ref @ weights[i] + biases[i]
        ref = jnp.where(ref >= 0, ref, alpha * ref)
    ref = ref @ weights[-1] + biases[-1]
    assert out.shape == (N, OUTPUT_DIM)
    assert jnp.allclose(out, ref, atol=1e-4, rtol=1e-5), (
        float(jnp.max(jnp.abs(out - ref))))

    print("KERNEL_OK")
</pallas_src>

<mosaic_0001>
module attributes {stable_mosaic.version = 11 : i64} {
  func.func @_fused_mlp_kernel(%arg0: i32, %arg1: memref<128x128xf32, #tpu.memory_space<vmem>>, %arg2: memref<128x128xf32, #tpu.memory_space<vmem>>, %arg3: memref<1x128xf32, #tpu.memory_space<vmem>>, %arg4: memref<128x128xf32, #tpu.memory_space<vmem>>, %arg5: memref<1x128xf32, #tpu.memory_space<vmem>>, %arg6: memref<128x128xf32, #tpu.memory_space<vmem>>, %arg7: memref<1x128xf32, #tpu.memory_space<vmem>>, %arg8: memref<1x1xf32, #tpu.memory_space<smem>>, %arg9: memref<128x128xf32, #tpu.memory_space<vmem>>) attributes {dimension_semantics = [#tpu.dimension_semantics<parallel>], iteration_bounds = array<i64: 2>, scalar_prefetch = 0 : i64, scratch_operands = 0 : i64, tpu.core_type = #tpu.core_type<tc>, window_params = [{transform_indices = @transform_0, window_bounds = array<i64: 128, 128>}, {pipeline_mode = #tpu.pipeline_mode<synchronous>, transform_indices = @transform_1, window_bounds = array<i64: 128, 128>}, {pipeline_mode = #tpu.pipeline_mode<synchronous>, transform_indices = @transform_2, window_bounds = array<i64: 1, 128>}, {pipeline_mode = #tpu.pipeline_mode<synchronous>, transform_indices = @transform_3, window_bounds = array<i64: 128, 128>}, {pipeline_mode = #tpu.pipeline_mode<synchronous>, transform_indices = @transform_4, window_bounds = array<i64: 1, 128>}, {pipeline_mode = #tpu.pipeline_mode<synchronous>, transform_indices = @transform_5, window_bounds = array<i64: 128, 128>}, {pipeline_mode = #tpu.pipeline_mode<synchronous>, transform_indices = @transform_6, window_bounds = array<i64: 1, 128>}, {transform_indices = @transform_7, window_bounds = array<i64: 1, 1>}, {transform_indices = @transform_8, window_bounds = array<i64: 128, 128>}]} {
    %c0 = arith.constant 0 : index
    %c0_0 = arith.constant 0 : index
    %0 = memref.load %arg8[%c0, %c0_0] : memref<1x1xf32, #tpu.memory_space<smem>>
    %c0_1 = arith.constant 0 : index
    %c0_2 = arith.constant 0 : index
    %1 = vector.load %arg1[%c0_1, %c0_2] : memref<128x128xf32, #tpu.memory_space<vmem>>, vector<128x128xf32>
    %c0_3 = arith.constant 0 : index
    %c0_4 = arith.constant 0 : index
    %2 = vector.load %arg2[%c0_3, %c0_4] : memref<128x128xf32, #tpu.memory_space<vmem>>, vector<128x128xf32>
    %cst = arith.constant dense<0.000000e+00> : vector<128x128xf32>
    %3 = tpu.matmul %1, %2, %cst {dimension_numbers = #tpu.dot_dimension_numbers<[1], [0], [0], [1], [0, 0, 1, 1], [], []>} : vector<128x128xf32>, vector<128x128xf32>, vector<128x128xf32> -> vector<128x128xf32>
    %c0_5 = arith.constant 0 : index
    %c0_6 = arith.constant 0 : index
    %4 = vector.load %arg3[%c0_5, %c0_6] : memref<1x128xf32, #tpu.memory_space<vmem>>, vector<1x128xf32>
    %5 = vector.broadcast %4 : vector<1x128xf32> to vector<128x128xf32>
    %6 = arith.addf %3, %5 : vector<128x128xf32>
    %cst_7 = arith.constant 0.000000e+00 : f32
    %7 = vector.broadcast %cst_7 : f32 to vector<128x128xf32>
    %8 = arith.cmpf oge, %6, %7 : vector<128x128xf32>
    %9 = vector.broadcast %0 : f32 to vector<128x128xf32>
    %10 = arith.mulf %9, %6 : vector<128x128xf32>
    %11 = arith.select %8, %6, %10 : vector<128x128xi1>, vector<128x128xf32>
    %c0_8 = arith.constant 0 : index
    %c0_9 = arith.constant 0 : index
    %12 = vector.load %arg4[%c0_8, %c0_9] : memref<128x128xf32, #tpu.memory_space<vmem>>, vector<128x128xf32>
    %cst_10 = arith.constant dense<0.000000e+00> : vector<128x128xf32>
    %13 = tpu.matmul %11, %12, %cst_10 {dimension_numbers = #tpu.dot_dimension_numbers<[1], [0], [0], [1], [0, 0, 1, 1], [], []>} : vector<128x128xf32>, vector<128x128xf32>, vector<128x128xf32> -> vector<128x128xf32>
    %c0_11 = arith.constant 0 : index
    %c0_12 = arith.constant 0 : index
    %14 = vector.load %arg5[%c0_11, %c0_12] : memref<1x128xf32, #tpu.memory_space<vmem>>, vector<1x128xf32>
    %15 = vector.broadcast %14 : vector<1x128xf32> to vector<128x128xf32>
    %16 = arith.addf %13, %15 : vector<128x128xf32>
    %cst_13 = arith.constant 0.000000e+00 : f32
    %17 = vector.broadcast %cst_13 : f32 to vector<128x128xf32>
    %18 = arith.cmpf oge, %16, %17 : vector<128x128xf32>
    %19 = vector.broadcast %0 : f32 to vector<128x128xf32>
    %20 = arith.mulf %19, %16 : vector<128x128xf32>
    %21 = arith.select %18, %16, %20 : vector<128x128xi1>, vector<128x128xf32>
    %c0_14 = arith.constant 0 : index
    %c0_15 = arith.constant 0 : index
    %22 = vector.load %arg6[%c0_14, %c0_15] : memref<128x128xf32, #tpu.memory_space<vmem>>, vector<128x128xf32>
    %cst_16 = arith.constant dense<0.000000e+00> : vector<128x128xf32>
    %23 = tpu.matmul %21, %22, %cst_16 {dimension_numbers = #tpu.dot_dimension_numbers<[1], [0], [0], [1], [0, 0, 1, 1], [], []>} : vector<128x128xf32>, vector<128x128xf32>, vector<128x128xf32> -> vector<128x128xf32>
    %c0_17 = arith.constant 0 : index
    %c0_18 = arith.constant 0 : index
    %24 = vector.load %arg7[%c0_17, %c0_18] : memref<1x128xf32, #tpu.memory_space<vmem>>, vector<1x128xf32>
    %25 = vector.broadcast %24 : vector<1x128xf32> to vector<128x128xf32>
    %26 = arith.addf %23, %25 : vector<128x128xf32>
    %c0_19 = arith.constant 0 : index
    %c0_20 = arith.constant 0 : index
    %27 = vector.load %arg9[%c0_19, %c0_20] : memref<128x128xf32, #tpu.memory_space<vmem>>, vector<128x128xf32>
    tpu.vector_store %arg9[%c0_19, %c0_20], %26 {strides = array<i32>} : memref<128x128xf32, #tpu.memory_space<vmem>>, vector<128x128xf32>,
    return
  }
  func.func @transform_0(%arg0: i32) -> (i32, i32) {
    %c0_i32 = arith.constant 0 : i32
    %c0_i32_0 = arith.constant 0 : i32
    return %arg0, %c0_i32 : i32, i32
  }
  func.func @transform_1(%arg0: i32) -> (i32, i32) {
    %c0_i32 = arith.constant 0 : i32
    %c0_i32_0 = arith.constant 0 : i32
    %c0_i32_1 = arith.constant 0 : i32
    return %c0_i32, %c0_i32_0 : i32, i32
  }
  func.func @transform_2(%arg0: i32) -> (i32, i32) {
    %c0_i32 = arith.constant 0 : i32
    %c0_i32_0 = arith.constant 0 : i32
    %c0_i32_1 = arith.constant 0 : i32
    return %c0_i32, %c0_i32_0 : i32, i32
  }
  func.func @transform_3(%arg0: i32) -> (i32, i32) {
    %c0_i32 = arith.constant 0 : i32
    %c0_i32_0 = arith.constant 0 : i32
    %c0_i32_1 = arith.constant 0 : i32
    return %c0_i32, %c0_i32_0 : i32, i32
  }
  func.func @transform_4(%arg0: i32) -> (i32, i32) {
    %c0_i32 = arith.constant 0 : i32
    %c0_i32_0 = arith.constant 0 : i32
    %c0_i32_1 = arith.constant 0 : i32
    return %c0_i32, %c0_i32_0 : i32, i32
  }
  func.func @transform_5(%arg0: i32) -> (i32, i32) {
    %c0_i32 = arith.constant 0 : i32
    %c0_i32_0 = arith.constant 0 : i32
    %c0_i32_1 = arith.constant 0 : i32
    return %c0_i32, %c0_i32_0 : i32, i32
  }
  func.func @transform_6(%arg0: i32) -> (i32, i32) {
    %c0_i32 = arith.constant 0 : i32
    %c0_i32_0 = arith.constant 0 : i32
    %c0_i32_1 = arith.constant 0 : i32
    return %c0_i32, %c0_i32_0 : i32, i32
  }
  func.func @transform_7(%arg0: i32) -> (i32, i32) {
    %c0_i32 = arith.constant 0 : i32
    %c0_i32_0 = arith.constant 0 : i32
    %c0_i32_1 = arith.constant 0 : i32
    return %c0_i32, %c0_i32_0 : i32, i32
  }
  func.func @transform_8(%arg0: i32) -> (i32, i32) {
    %c0_i32 = arith.constant 0 : i32
    %c0_i32_0 = arith.constant 0 : i32
    return %arg0, %c0_i32 : i32, i32
  }
}

</mosaic_0001>

<bundles_post_ra>
// kernel: _mlp_forward_jit.1
= control target key start
LH: loop header
LB: loop body
LE: loop exit
PB: predicated region body
PF: predicated region fallthrough
CT: control target
= control target key end

     0   :  { %s877_s29 = smov 0   ;;  %s1160_s0 = inlined_call_operand.vmem [shape: f32[256,128], index: 0, kind: input, shape index: {}]   ;;  %s1161_s1 = inlined_call_operand.vmem [shape: f32[128,128], index: 1, kind: input, shape index: {}]   ;;  %s1162_s2 = inlined_call_operand.vmem [shape: f32[1,128], index: 2, kind: input, shape index: {}]   ;;  %s1163_s3 = inlined_call_operand.vmem [shape: f32[128,128], index: 3, kind: input, shape index: {}]   ;;  %s1164_s4 = inlined_call_operand.vmem [shape: f32[1,128], index: 4, kind: input, shape index: {}]   ;;  %s1165_s5 = inlined_call_operand.vmem [shape: f32[128,128], index: 5, kind: input, shape index: {}]   ;;  %s1166_s6 = inlined_call_operand.vmem [shape: f32[1,128], index: 6, kind: input, shape index: {}]   ;;  %s1167_s7 = inlined_call_operand.<no memory space> [shape: f32[1,1], index: 7, kind: input, shape index: {}]   ;;  %s1168_s8 = inlined_call_operand.vmem [shape: f32[256,128], index: 8, kind: output, shape index: {}]  }
   0x1   :  { %13 = sst [smem:[#allocation2]] %s1167_s7 }
   0x2 LB: > { %s751_s30 = sadd.s32 4294967295, %s827_s29   ;;  %p755_p0 = scmp.ge.s32.totalorder %s827_s29, 1  ;;  %s827_s29 = sphi %s877_s29, %s19_s29  }
   0x3   : > { %p264_p1 = scmp.lt.s32.totalorder %s827_s29, 3 }
   0x5   : > { %p265_p2 = pnand %p755_p0, %p264_p1 }
   0x6   : > { %s756_s24 = sshll.u32 (!%p265_p2), %s751_s30, 4 }
   0x7   : > { %268 = sbr.rel (%p265_p2) target bundleno = 529 (0x211), region = 52  ;;  %p299_p3 = scmp.lt.s32.totalorder (!%p265_p2), %s756_s24, 31 }
   0xc   : > { %v342_v0 = vld [vmem:[%s1161_s1 + $0x78] sm:$0xff]  ;;  %v341_v1 = vld [vmem:[%s1161_s1 + $0x70] sm:$0xff]  ;;  %v340_v2 = vld [vmem:[%s1161_s1 + $0x68] sm:$0xff]  ;;  %s1170_s24 = smov (!%p299_p3, %s756_s24), 31 }
   0xd   : > { %347 = vmatpush.msra.mxu0 %v342_v0  ;;  %762 = vmatpush.msra.mxu3 %v342_v0  ;;  %v339_v3 = vld [vmem:[%s1161_s1 + $0x60] sm:$0xff]  ;;  %v338_v4 = vld [vmem:[%s1161_s1 + $0x58] sm:$0xff]  ;;  %v337_v5 = vld [vmem:[%s1161_s1 + $0x50] sm:$0xff]  ;;  %s757_s13 = sshll.u32 %s1170_s24, 3 }
   0xe   : > { %v336_v6 = vld [vmem:[%s1161_s1 + $0x48] sm:$0xff]  ;;  %v335_v7 = vld [vmem:[%s1161_s1 + $0x40] sm:$0xff]  ;;  %v334_v8 = vld [vmem:[%s1161_s1 + $0x38] sm:$0xff]  ;;  %s938_s20 = scalar_lea.vmem %s1160_s0, %s757_s13  ;;  %s1139_s16 = scalar_lea.vmem %s1168_s8, %s757_s13 }
   0xf   : > { %348 = vmatpush.msra.mxu0 %v341_v1  ;;  %763 = vmatpush.msra.mxu3 %v341_v1  ;;  %v333_v9 = vld [vmem:[%s1161_s1 + $0x30] sm:$0xff]  ;;  %v332_v10 = vld [vmem:[%s1161_s1 + $0x28] sm:$0xff]  ;;  %v331_v11 = vld [vmem:[%s1161_s1 + $0x20] sm:$0xff] }
  0x10   : > { %v330_v12 = vld [vmem:[%s1161_s1 + $0x18] sm:$0xff]  ;;  %v329_v13 = vld [vmem:[%s1161_s1 + $0x10] sm:$0xff]  ;;  %v328_v14 = vld [vmem:[%s1161_s1 + $0x8] sm:$0xff] }
  0x11   : > { %349 = vmatpush.msra.mxu0 %v340_v2  ;;  %764 = vmatpush.msra.mxu3 %v340_v2  ;;  %v327_v15 = vld [vmem:[%s1161_s1] sm:$0xff]  ;;  %v312_v17 = vld [vmem:[%s938_s20 + $0x8] sm:$0xff]  ;;  %v313_v18 = vld [vmem:[%s938_s20 + $0x10] sm:$0xff] }
  0x12   : > { %v311_v16 = vld [vmem:[%s938_s20] sm:$0xff]  ;;  %v314_v20 = vld [vmem:[%s938_s20 + $0x18] sm:$0xff]  ;;  %v324_v21 = vld [vmem:[%s938_s20 + $0x68] sm:$0xff] }
  0x13   : > { %350 = vmatpush.msra.mxu0 %v339_v3  ;;  %765 = vmatpush.msra.mxu3 %v339_v3  ;;  %v323_v19 = vld [vmem:[%s938_s20 + $0x60] sm:$0xff]  ;;  %v325_v23 = vld [vmem:[%s938_s20 + $0x70] sm:$0xff]  ;;  %v316_v24 = vld [vmem:[%s938_s20 + $0x28] sm:$0xff] }
  0x14   : > { %v315_v22 = vld [vmem:[%s938_s20 + $0x20] sm:$0xff]  ;;  %v326_v25 = vld [vmem:[%s938_s20 + $0x78] sm:$0xff]  ;;  %v317_v26 = vld [vmem:[%s938_s20 + $0x30] sm:$0xff] }
  0x15   : > { %351 = vmatpush.msra.mxu0 %v338_v4  ;;  %766 = vmatpush.msra.mxu3 %v338_v4  ;;  %v318_v27 = vld [vmem:[%s938_s20 + $0x38] sm:$0xff]  ;;  %v475_v29 = vld [vmem:[%s1163_s3 + $0x70] sm:$0xff]  ;;  %v474_v30 = vld [vmem:[%s1163_s3 + $0x68] sm:$0xff] }
  0x16   : > { %v476_v28 = vld [vmem:[%s1163_s3 + $0x78] sm:$0xff]  ;;  %v473_v31 = vld [vmem:[%s1163_s3 + $0x60] sm:$0xff]  ;;  %v471_v34 = vld [vmem:[%s1163_s3 + $0x50] sm:$0xff] }
  0x17   : > { %352 = vmatpush.msra.mxu0 %v337_v5  ;;  %767 = vmatpush.msra.mxu3 %v337_v5  ;;  %v319_v32 = vld [vmem:[%s938_s20 + $0x40] sm:$0xff]  ;;  %v472_v33 = vld [vmem:[%s1163_s3 + $0x58] sm:$0xff]  ;;  %v470_v35 = vld [vmem:[%s1163_s3 + $0x48] sm:$0xff] }
  0x18   : > { %481 = vmatpush.msra.mxu1 %v476_v28  ;;  %v469_v36 = vld [vmem:[%s1163_s3 + $0x40] sm:$0xff]  ;;  %v320_v37 = vld [vmem:[%s938_s20 + $0x48] sm:$0xff]  ;;  %v468_v38 = vld [vmem:[%s1163_s3 + $0x38] sm:$0xff] }
  0x19   : > { %353 = vmatpush.msra.mxu0 %v336_v6  ;;  %768 = vmatpush.msra.mxu3 %v336_v6  ;;  %v467_v39 = vld [vmem:[%s1163_s3 + $0x30] sm:$0xff]  ;;  %v466_v40 = vld [vmem:[%s1163_s3 + $0x28] sm:$0xff]  ;;  %v465_v41 = vld [vmem:[%s1163_s3 + $0x20] sm:$0xff] }
  0x1a   : > { %482 = vmatpush.msra.mxu1 %v475_v29  ;;  %v321_v42 = vld [vmem:[%s938_s20 + $0x50] sm:$0xff]  ;;  %v464_v43 = vld [vmem:[%s1163_s3 + $0x18] sm:$0xff]  ;;  %v462_v46 = vld [vmem:[%s1163_s3 + $0x8] sm:$0xff] }
  0x1b   : > { %354 = vmatpush.msra.mxu0 %v335_v7  ;;  %769 = vmatpush.msra.mxu3 %v335_v7  ;;  %v322_v44 = vld [vmem:[%s938_s20 + $0x58] sm:$0xff]  ;;  %v463_v45 = vld [vmem:[%s1163_s3 + $0x10] sm:$0xff]  ;;  %v461_v47 = vld [vmem:[%s1163_s3] sm:$0xff]  ;;  %s310_s20 = sld [smem:[#allocation2]] }
  0x1c   : > { %483 = vmatpush.msra.mxu1 %v474_v30  ;;  %v1010_v48 = vld [vmem:[%s1162_s2] ss:$0 sm:$0xff] }
  0x1d   : > { %355 = vmatpush.msra.mxu0 %v334_v8  ;;  %770 = vmatpush.msra.mxu3 %v334_v8 }
  0x1e   : > { %484 = vmatpush.msra.mxu1 %v473_v31 }
  0x1f   : > { %356 = vmatpush.msra.mxu0 %v333_v9  ;;  %771 = vmatpush.msra.mxu3 %v333_v9 }
  0x20   : > { %485 = vmatpush.msra.mxu1 %v472_v33 }
  0x21   : > { %357 = vmatpush.msra.mxu0 %v332_v10  ;;  %772 = vmatpush.msra.mxu3 %v332_v10  ;;  %v1012_v50 = vstv %s310_s20 }
  0x22   : > { %486 = vmatpush.msra.mxu1 %v471_v34 }
  0x23   : > { %358 = vmatpush.msra.mxu0 %v331_v11  ;;  %773 = vmatpush.msra.mxu3 %v331_v11 }
  0x24   : > { %487 = vmatpush.msra.mxu1 %v470_v35 }
  0x25   : > { %359 = vmatpush.msra.mxu0 %v330_v12  ;;  %774 = vmatpush.msra.mxu3 %v330_v12 }
  0x26   : > { %488 = vmatpush.msra.mxu1 %v469_v36 }
  0x27   : > { %360 = vmatpush.msra.mxu0 %v329_v13  ;;  %775 = vmatpush.msra.mxu3 %v329_v13 }
  0x28   : > { %489 = vmatpush.msra.mxu1 %v468_v38 }
  0x29   : > { %361 = vmatpush.msra.mxu0 %v328_v14  ;;  %776 = vmatpush.msra.mxu3 %v328_v14 }
  0x2a   : > { %490 = vmatpush.msra.mxu1 %v467_v39 }
  0x2b   : > { %362 = vmatpush.msra.mxu0 %v327_v15  ;;  %777 = vmatpush.msra.mxu3 %v327_v15 }
  0x2c   : > { %363 = vmatmul.f32.vlgmr.msra.gmra.mxu0 %v311_v16  ;;  %399 = vmatmul.f32.vlgmr.msra.gmra.mxu3 %v323_v19 }
  0x2d   : > { %778 = vmatpush.msrb.mxu3 %v476_v28  ;;  %491 = vmatpush.msra.mxu1 %v466_v40 }
  0x2f   : > { %779 = vmatpush.msrb.mxu3 %v475_v29  ;;  %492 = vmatpush.msra.mxu1 %v465_v41 }
  0x31   : > { %780 = vmatpush.msrb.mxu3 %v474_v30  ;;  %493 = vmatpush.msra.mxu1 %v464_v43 }
  0x33   : > { %781 = vmatpush.msrb.mxu3 %v473_v31  ;;  %494 = vmatpush.msra.mxu1 %v463_v45 }
  0x34   : > { %366 = vmatmul.f32.gmra.mxu0 %v312_v17  ;;  %402 = vmatmul.f32.gmra.mxu3 %v324_v21 }
  0x35   : > { %782 = vmatpush.msrb.mxu3 %v472_v33  ;;  %495 = vmatpush.msra.mxu1 %v462_v46 }
  0x37   : > { %783 = vmatpush.msrb.mxu3 %v471_v34  ;;  %496 = vmatpush.msra.mxu1 %v461_v47  ;;  %v609_v34 = vld [vmem:[%s1165_s5 + $0x78] sm:$0xff] }
  0x38   : > { %614 = vmatpush.msra.mxu2 %v609_v34 }
  0x39   : > { %784 = vmatpush.msrb.mxu3 %v470_v35  ;;  %v608_v35 = vld [vmem:[%s1165_s5 + $0x70] sm:$0xff] }
  0x3a   : > { %615 = vmatpush.msra.mxu2 %v608_v35 }
  0x3b   : > { %785 = vmatpush.msrb.mxu3 %v469_v36 }
  0x3c   : > { %369 = vmatmul.f32.gmra.mxu0 %v313_v18  ;;  %405 = vmatmul.f32.gmra.mxu3 %v325_v23 }
  0x3d   : > { %786 = vmatpush.msrb.mxu3 %v468_v38 }
  0x3f   : > { %787 = vmatpush.msrb.mxu3 %v467_v39  ;;  %v606_v39 = vld [vmem:[%s1165_s5 + $0x60] sm:$0xff] }
  0x41   : > { %788 = vmatpush.msrb.mxu3 %v466_v40 }
  0x43   : > { %789 = vmatpush.msrb.mxu3 %v465_v41  ;;  %v605_v41 = vld [vmem:[%s1165_s5 + $0x58] sm:$0xff] }
  0x44   : > { %372 = vmatmul.f32.gmra.mxu0 %v314_v20  ;;  %408 = vmatmul.f32.gmra.mxu3 %v326_v25 }
  0x45   : > { %790 = vmatpush.msrb.mxu3 %v464_v43  ;;  %v604_v43 = vld [vmem:[%s1165_s5 + $0x50] sm:$0xff] }
  0x47   : > { %791 = vmatpush.msrb.mxu3 %v463_v45  ;;  %v603_v45 = vld [vmem:[%s1165_s5 + $0x48] sm:$0xff] }
  0x49   : > { %792 = vmatpush.msrb.mxu3 %v462_v46 }
  0x4b   : > { %793 = vmatpush.msrb.mxu3 %v461_v47  ;;  %v602_v47 = vld [vmem:[%s1165_s5 + $0x40] sm:$0xff] }
  0x4c   : > { %375 = vmatmul.f32.gmra.mxu0 %v315_v22 }
  0x4d   : > { %794 = vmatpush.msra.mxu3 %v609_v34 }
  0x4f   : > { %795 = vmatpush.msra.mxu3 %v608_v35 }
  0x54   : > { %378 = vmatmul.f32.gmra.mxu0 %v316_v24 }
  0x5c   : > { %381 = vmatmul.f32.gmra.mxu0 %v317_v26 }
  0x64   : > { %384 = vmatmul.f32.gmra.mxu0 %v318_v27 }
  0x6c   : > { %387 = vmatmul.f32.gmra.mxu0 %v319_v32 }
  0x74   : > { %390 = vmatmul.f32.gmra.mxu0 %v320_v37  ;;  %v607_v37 = vld [vmem:[%s1165_s5 + $0x68] sm:$0xff] }
  0x75   : > { %616 = vmatpush.msra.mxu2 %v607_v37  ;;  %796 = vmatpush.msra.mxu3 %v607_v37 }
  0x77   : > { %617 = vmatpush.msra.mxu2 %v606_v39  ;;  %797 = vmatpush.msra.mxu3 %v606_v39 }
  0x79   : > { %618 = vmatpush.msra.mxu2 %v605_v41  ;;  %798 = vmatpush.msra.mxu3 %v605_v41 }
  0x7b   : > { %619 = vmatpush.msra.mxu2 %v604_v43  ;;  %799 = vmatpush.msra.mxu3 %v604_v43 }
  0x7c   : > { %393 = vmatmul.f32.gmra.mxu0 %v321_v42 }
  0x7d   : > { %620 = vmatpush.msra.mxu2 %v603_v45  ;;  %800 = vmatpush.msra.mxu3 %v603_v45 }
  0x7f   : > { %621 = vmatpush.msra.mxu2 %v602_v47  ;;  %801 = vmatpush.msra.mxu3 %v602_v47 }
  0x84   : > { %396 = vmatmul.f32.gmra.mxu0 %v322_v44 }
  0xa9   : > { %v364_v49 = vpop.f32.mrf.mxu0 }
  0xaa   : > { %v365_v51 = vadd.f32 %v1010_v48, %v364_v49 }
  0xac   : > { %vm412_vm0 = vcmp.ge.f32.partialorder %v365_v51, 0.0  ;;  %v429_v52 = vmul.f32 %v1012_v50, %v365_v51 }
  0xae   : > { %v445_v53 = vsel %vm412_vm0, %v365_v51, %v429_v52  ;;  %v601_v51 = vld [vmem:[%s1165_s5 + $0x38] sm:$0xff] }
  0xaf   : > { %497 = vmatmul.f32.vlgmr.msra.gmra.mxu1 %v445_v53  ;;  %v400_v62 = vpop.f32.mrf.mxu3  ;;  %v600_v53 = vld [vmem:[%s1165_s5 + $0x30] sm:$0xff]  ;;  %622 = vmatpush.msra.mxu2 %v601_v51 }
  0xb0   : > { %v401_v63 = vadd.f32 %v1010_v48, %v400_v62  ;;  %802 = vmatpush.msra.mxu3 %v601_v51 }
  0xb1   : > { %v367_v54 = vpop.f32.mrf.mxu0  ;;  %623 = vmatpush.msra.mxu2 %v600_v53 }
  0xb2   : > { %v368_v55 = vadd.f32 %v1010_v48, %v367_v54  ;;  %v441_v2 = vmul.f32 %v1012_v50, %v401_v63  ;;  %vm424_vm3 = vcmp.ge.f32.partialorder %v401_v63, 0.0  ;;  %803 = vmatpush.msra.mxu3 %v600_v53 }
  0xb4   : > { %vm413_vm1 = vcmp.ge.f32.partialorder %v368_v55, 0.0  ;;  %v430_v56 = vmul.f32 %v1012_v50, %v368_v55  ;;  %v457_v4 = vsel %vm424_vm3, %v401_v63, %v441_v2  ;;  %v595_v2 = vld [vmem:[%s1165_s5 + $0x8] sm:$0xff] }
  0xb5   : > { %533 = vmatmul.f32.vlgmr.msrb.gmra.mxu3 %v457_v4 }
  0xb6   : > { %v446_v57 = vsel %vm413_vm1, %v368_v55, %v430_v56  ;;  %v599_v55 = vld [vmem:[%s1165_s5 + $0x28] sm:$0xff] }
  0xb7   : > { %500 = vmatmul.f32.gmra.mxu1 %v446_v57  ;;  %v403_v6 = vpop.f32.mrf.mxu3  ;;  %v598_v57 = vld [vmem:[%s1165_s5 + $0x20] sm:$0xff]  ;;  %624 = vmatpush.msra.mxu2 %v599_v55 }
  0xb8   : > { %v404_v7 = vadd.f32 %v1010_v48, %v403_v6  ;;  %804 = vmatpush.msra.mxu3 %v599_v55 }
  0xb9   : > { %v370_v58 = vpop.f32.mrf.mxu0  ;;  %625 = vmatpush.msra.mxu2 %v598_v57 }
  0xba   : > { %v371_v59 = vadd.f32 %v1010_v48, %v370_v58  ;;  %vm425_vm5 = vcmp.ge.f32.partialorder %v404_v7, 0.0  ;;  %v442_v10 = vmul.f32 %v1012_v50, %v404_v7  ;;  %805 = vmatpush.msra.mxu3 %v598_v57 }
  0xbc   : > { %vm414_vm2 = vcmp.ge.f32.partialorder %v371_v59, 0.0  ;;  %v431_v60 = vmul.f32 %v1012_v50, %v371_v59  ;;  %v458_v12 = vsel %vm425_vm5, %v404_v7, %v442_v10 }
  0xbd   : > { %536 = vmatmul.f32.gmra.mxu3 %v458_v12 }
  0xbe   : > { %v447_v61 = vsel %vm414_vm2, %v371_v59, %v431_v60  ;;  %v597_v59 = vld [vmem:[%s1165_s5 + $0x18] sm:$0xff] }
  0xbf   : > { %503 = vmatmul.f32.gmra.mxu1 %v447_v61  ;;  %v406_v14 = vpop.f32.mrf.mxu3  ;;  %626 = vmatpush.msra.mxu2 %v597_v59 }
  0xc0   : > { %v407_v15 = vadd.f32 %v1010_v48, %v406_v14  ;;  %806 = vmatpush.msra.mxu3 %v597_v59 }
  0xc1   : > { %v373_v0 = vpop.f32.mrf.mxu0 }
  0xc2   : > { %v374_v1 = vadd.f32 %v1010_v48, %v373_v0  ;;  %vm426_vm7 = vcmp.ge.f32.partialorder %v407_v15, 0.0  ;;  %v443_v18 = vmul.f32 %v1012_v50, %v407_v15 }
  0xc4   : > { %vm415_vm4 = vcmp.ge.f32.partialorder %v374_v1, 0.0  ;;  %v432_v3 = vmul.f32 %v1012_v50, %v374_v1  ;;  %v459_v20 = vsel %vm426_vm7, %v407_v15, %v443_v18 }
  0xc5   : > { %539 = vmatmul.f32.gmra.mxu3 %v459_v20 }
  0xc6   : > { %v448_v5 = vsel %vm415_vm4, %v374_v1, %v432_v3  ;;  %v596_v1 = vld [vmem:[%s1165_s5 + $0x10] sm:$0xff]  ;;  %v594_v3 = vld [vmem:[%s1165_s5] sm:$0xff] }
  0xc7   : > { %506 = vmatmul.f32.gmra.mxu1 %v448_v5  ;;  %v409_v22 = vpop.f32.mrf.mxu3  ;;  %627 = vmatpush.msra.mxu2 %v596_v1 }
  0xc8   : > { %v410_v23 = vadd.f32 %v1010_v48, %v409_v22  ;;  %807 = vmatpush.msra.mxu3 %v596_v1 }
  0xc9   : > { %v376_v8 = vpop.f32.mrf.mxu0  ;;  %628 = vmatpush.msra.mxu2 %v595_v2 }
  0xca   : > { %v377_v9 = vadd.f32 %v1010_v48, %v376_v8  ;;  %vm427_vm9 = vcmp.ge.f32.partialorder %v410_v23, 0.0  ;;  %v444_v26 = vmul.f32 %v1012_v50, %v410_v23  ;;  %808 = vmatpush.msra.mxu3 %v595_v2 }
  0xcb   : > { %629 = vmatpush.msra.mxu2 %v594_v3 }
  0xcc   : > { %vm416_vm6 = vcmp.ge.f32.partialorder %v377_v9, 0.0  ;;  %v433_v11 = vmul.f32 %v1012_v50, %v377_v9  ;;  %v460_v28 = vsel %vm427_vm9, %v410_v23, %v444_v26  ;;  %809 = vmatpush.msra.mxu3 %v594_v3 }
  0xcd   : > { %542 = vmatmul.f32.gmra.mxu3 %v460_v28 }
  0xce   : > { %v449_v13 = vsel %vm416_vm6, %v377_v9, %v433_v11 }
  0xcf   : > { %509 = vmatmul.f32.gmra.mxu1 %v449_v13 }
  0xd1   : > { %v379_v16 = vpop.f32.mrf.mxu0 }
  0xd2   : > { %v380_v17 = vadd.f32 %v1010_v48, %v379_v16 }
  0xd4   : > { %vm417_vm8 = vcmp.ge.f32.partialorder %v380_v17, 0.0  ;;  %v434_v19 = vmul.f32 %v1012_v50, %v380_v17 }
  0xd6   : > { %v450_v21 = vsel %vm417_vm8, %v380_v17, %v434_v19 }
  0xd7   : > { %512 = vmatmul.f32.gmra.mxu1 %v450_v21 }
  0xd9   : > { %v382_v24 = vpop.f32.mrf.mxu0 }
  0xda   : > { %v383_v25 = vadd.f32 %v1010_v48, %v382_v24 }
  0xdc   : > { %vm418_vm10 = vcmp.ge.f32.partialorder %v383_v25, 0.0  ;;  %v435_v27 = vmul.f32 %v1012_v50, %v383_v25 }
  0xde   : > { %v451_v29 = vsel %vm418_vm10, %v383_v25, %v435_v27 }
  0xdf   : > { %515 = vmatmul.f32.gmra.mxu1 %v451_v29 }
  0xe1   : > { %v385_v30 = vpop.f32.mrf.mxu0 }
  0xe2   : > { %v386_v31 = vadd.f32 %v1010_v48, %v385_v30 }
  0xe4   : > { %vm419_vm11 = vcmp.ge.f32.partialorder %v386_v31, 0.0  ;;  %v436_v32 = vmul.f32 %v1012_v50, %v386_v31 }
  0xe6   : > { %v452_v33 = vsel %vm419_vm11, %v386_v31, %v436_v32 }
  0xe7   : > { %518 = vmatmul.f32.gmra.mxu1 %v452_v33 }
  0xe9   : > { %v388_v36 = vpop.f32.mrf.mxu0 }
  0xea   : > { %v389_v38 = vadd.f32 %v1010_v48, %v388_v36 }
  0xec   : > { %vm420_vm12 = vcmp.ge.f32.partialorder %v389_v38, 0.0  ;;  %v437_v40 = vmul.f32 %v1012_v50, %v389_v38 }
  0xee   : > { %v453_v42 = vsel %vm420_vm12, %v389_v38, %v437_v40 }
  0xef   : > { %521 = vmatmul.f32.gmra.mxu1 %v453_v42 }
  0xf1   : > { %v391_v44 = vpop.f32.mrf.mxu0 }
  0xf2   : > { %v392_v46 = vadd.f32 %v1010_v48, %v391_v44 }
  0xf4   : > { %vm421_vm13 = vcmp.ge.f32.partialorder %v392_v46, 0.0  ;;  %v438_v49 = vmul.f32 %v1012_v50, %v392_v46 }
  0xf6   : > { %v454_v52 = vsel %vm421_vm13, %v392_v46, %v438_v49 }
  0xf7   : > { %524 = vmatmul.f32.gmra.mxu1 %v454_v52 }
  0xf9   : > { %v394_v54 = vpop.f32.mrf.mxu0 }
  0xfa   : > { %v395_v56 = vadd.f32 %v1010_v48, %v394_v54 }
  0xfc   : > { %vm422_vm14 = vcmp.ge.f32.partialorder %v395_v56, 0.0  ;;  %v439_v58 = vmul.f32 %v1012_v50, %v395_v56 }
  0xfe   : > { %v455_v60 = vsel %vm422_vm14, %v395_v56, %v439_v58 }
  0xff   : > { %527 = vmatmul.f32.gmra.mxu1 %v455_v60 }
 0x101   : > { %v397_v61 = vpop.f32.mrf.mxu0 }
 0x102   : > { %v398_v62 = vadd.f32 %v1010_v48, %v397_v61  ;;  %v1097_v48 = vld [vmem:[%s1164_s4] ss:$0 sm:$0xff] }
 0x104   : > { %vm423_vm15 = vcmp.ge.f32.partialorder %v398_v62, 0.0  ;;  %v440_v63 = vmul.f32 %v1012_v50, %v398_v62 }
 0x106   : > { %v456_v0 = vsel %vm423_vm15, %v398_v62, %v440_v63 }
 0x107   : > { %530 = vmatmul.f32.gmra.mxu1 %v456_v0 }
 0x12c   : > { %v498_v4 = vpop.f32.mrf.mxu1 }
 0x12d   : > { %v499_v5 = vadd.f32 %v1097_v48, %v498_v4 }
 0x12f   : > { %vm546_vm0 = vcmp.ge.f32.partialorder %v499_v5, 0.0  ;;  %v562_v6 = vmul.f32 %v499_v5, %v1012_v50 }
 0x131   : > { %v578_v7 = vsel %vm546_vm0, %v499_v5, %v562_v6  ;;  %v820_v6 = vld [vmem:[%s1166_s6] ss:$0 sm:$0xff] }
 0x132   : > { %630 = vmatmul.f32.vlgmr.msra.gmra.mxu2 %v578_v7 }
 0x134   : > { %v501_v8 = vpop.f32.mrf.mxu1 }
 0x135   : > { %v502_v9 = vadd.f32 %v1097_v48, %v501_v8 }
 0x137   : > { %vm547_vm1 = vcmp.ge.f32.partialorder %v502_v9, 0.0  ;;  %v563_v10 = vmul.f32 %v502_v9, %v1012_v50 }
 0x138   : > { %v534_v19 = vpop.f32.mrf.mxu3 }
 0x139   : > { %v579_v11 = vsel %vm547_vm1, %v502_v9, %v563_v10  ;;  %v535_v21 = vadd.f32 %v1097_v48, %v534_v19 }
 0x13a   : > { %633 = vmatmul.f32.gmra.mxu2 %v579_v11 }
 0x13b   : > { %vm558_vm4 = vcmp.ge.f32.partialorder %v535_v21, 0.0  ;;  %v574_v22 = vmul.f32 %v535_v21, %v1012_v50 }
 0x13c   : > { %v504_v12 = vpop.f32.mrf.mxu1 }
 0x13d   : > { %v505_v13 = vadd.f32 %v1097_v48, %v504_v12  ;;  %v590_v25 = vsel %vm558_vm4, %v535_v21, %v574_v22 }
 0x13e   : > { %666 = vmatmul.f32.vlgmr.msra.gmra.mxu3 %v590_v25 }
 0x13f   : > { %vm548_vm2 = vcmp.ge.f32.partialorder %v505_v13, 0.0  ;;  %v564_v14 = vmul.f32 %v505_v13, %v1012_v50 }
 0x140   : > { %v537_v27 = vpop.f32.mrf.mxu3 }
 0x141   : > { %v580_v15 = vsel %vm548_vm2, %v505_v13, %v564_v14  ;;  %v538_v29 = vadd.f32 %v1097_v48, %v537_v27 }
 0x142   : > { %636 = vmatmul.f32.gmra.mxu2 %v580_v15 }
 0x143   : > { %v575_v30 = vmul.f32 %v538_v29, %v1012_v50  ;;  %vm559_vm6 = vcmp.ge.f32.partialorder %v538_v29, 0.0 }
 0x144   : > { %v507_v16 = vpop.f32.mrf.mxu1 }
 0x145   : > { %v508_v17 = vadd.f32 %v1097_v48, %v507_v16  ;;  %v591_v33 = vsel %vm559_vm6, %v538_v29, %v575_v30 }
 0x146   : > { %669 = vmatmul.f32.gmra.mxu3 %v591_v33 }
 0x147   : > { %vm549_vm3 = vcmp.ge.f32.partialorder %v508_v17, 0.0  ;;  %v565_v18 = vmul.f32 %v508_v17, %v1012_v50 }
 0x148   : > { %v540_v35 = vpop.f32.mrf.mxu3 }
 0x149   : > { %v581_v20 = vsel %vm549_vm3, %v508_v17, %v565_v18  ;;  %v541_v37 = vadd.f32 %v1097_v48, %v540_v35 }
 0x14a   : > { %639 = vmatmul.f32.gmra.mxu2 %v581_v20 }
 0x14b   : > { %v576_v38 = vmul.f32 %v541_v37, %v1012_v50  ;;  %vm560_vm8 = vcmp.ge.f32.partialorder %v541_v37, 0.0 }
 0x14c   : > { %v510_v23 = vpop.f32.mrf.mxu1 }
 0x14d   : > { %v511_v24 = vadd.f32 %v1097_v48, %v510_v23  ;;  %v592_v41 = vsel %vm560_vm8, %v541_v37, %v576_v38 }
 0x14e   : > { %672 = vmatmul.f32.gmra.mxu3 %v592_v41 }
 0x14f   : > { %vm550_vm5 = vcmp.ge.f32.partialorder %v511_v24, 0.0  ;;  %v566_v26 = vmul.f32 %v511_v24, %v1012_v50 }
 0x150   : > { %v543_v43 = vpop.f32.mrf.mxu3 }
 0x151   : > { %v582_v28 = vsel %vm550_vm5, %v511_v24, %v566_v26  ;;  %v544_v45 = vadd.f32 %v1097_v48, %v543_v43 }
 0x152   : > { %642 = vmatmul.f32.gmra.mxu2 %v582_v28 }
 0x153   : > { %v577_v46 = vmul.f32 %v544_v45, %v1012_v50  ;;  %vm561_vm10 = vcmp.ge.f32.partialorder %v544_v45, 0.0 }
 0x154   : > { %v513_v31 = vpop.f32.mrf.mxu1 }
 0x155   : > { %v514_v32 = vadd.f32 %v1097_v48, %v513_v31  ;;  %v593_v51 = vsel %vm561_vm10, %v544_v45, %v577_v46 }
 0x156   : > { %675 = vmatmul.f32.gmra.mxu3 %v593_v51 }
 0x157   : > { %vm551_vm7 = vcmp.ge.f32.partialorder %v514_v32, 0.0  ;;  %v567_v34 = vmul.f32 %v514_v32, %v1012_v50 }
 0x159   : > { %v583_v36 = vsel %vm551_vm7, %v514_v32, %v567_v34 }
 0x15a   : > { %645 = vmatmul.f32.gmra.mxu2 %v583_v36 }
 0x15c   : > { %v516_v39 = vpop.f32.mrf.mxu1 }
 0x15d   : > { %v517_v40 = vadd.f32 %v1097_v48, %v516_v39 }
 0x15f   : > { %vm552_vm9 = vcmp.ge.f32.partialorder %v517_v40, 0.0  ;;  %v568_v42 = vmul.f32 %v517_v40, %v1012_v50 }
 0x161   : > { %v584_v44 = vsel %vm552_vm9, %v517_v40, %v568_v42 }
 0x162   : > { %648 = vmatmul.f32.gmra.mxu2 %v584_v44 }
 0x164   : > { %v519_v47 = vpop.f32.mrf.mxu1 }
 0x165   : > { %v520_v49 = vadd.f32 %v1097_v48, %v519_v47 }
 0x167   : > { %vm553_vm11 = vcmp.ge.f32.partialorder %v520_v49, 0.0  ;;  %v569_v52 = vmul.f32 %v520_v49, %v1012_v50 }
 0x169   : > { %v585_v53 = vsel %vm553_vm11, %v520_v49, %v569_v52 }
 0x16a   : > { %651 = vmatmul.f32.gmra.mxu2 %v585_v53 }
 0x16c   : > { %v522_v54 = vpop.f32.mrf.mxu1 }
 0x16d   : > { %v523_v55 = vadd.f32 %v1097_v48, %v522_v54 }
 0x16f   : > { %vm554_vm12 = vcmp.ge.f32.partialorder %v523_v55, 0.0  ;;  %v570_v56 = vmul.f32 %v523_v55, %v1012_v50 }
 0x171   : > { %v586_v57 = vsel %vm554_vm12, %v523_v55, %v570_v56 }
 0x172   : > { %654 = vmatmul.f32.gmra.mxu2 %v586_v57 }
 0x174   : > { %v525_v58 = vpop.f32.mrf.mxu1 }
 0x175   : > { %v526_v59 = vadd.f32 %v1097_v48, %v525_v58 }
 0x177   : > { %vm555_vm13 = vcmp.ge.f32.partialorder %v526_v59, 0.0  ;;  %v571_v60 = vmul.f32 %v526_v59, %v1012_v50 }
 0x179   : > { %v587_v61 = vsel %vm555_vm13, %v526_v59, %v571_v60 }
 0x17a   : > { %657 = vmatmul.f32.gmra.mxu2 %v587_v61 }
 0x17c   : > { %v528_v62 = vpop.f32.mrf.mxu1 }
 0x17d   : > { %v529_v63 = vadd.f32 %v1097_v48, %v528_v62 }
 0x17f   : > { %vm556_vm14 = vcmp.ge.f32.partialorder %v529_v63, 0.0  ;;  %v572_v0 = vmul.f32 %v529_v63, %v1012_v50 }
 0x181   : > { %v588_v1 = vsel %vm556_vm14, %v529_v63, %v572_v0 }
 0x182   : > { %660 = vmatmul.f32.gmra.mxu2 %v588_v1 }
 0x184   : > { %v531_v2 = vpop.f32.mrf.mxu1 }
 0x185   : > { %v532_v3 = vadd.f32 %v1097_v48, %v531_v2 }
 0x187   : > { %vm557_vm15 = vcmp.ge.f32.partialorder %v532_v3, 0.0  ;;  %v573_v4 = vmul.f32 %v532_v3, %v1012_v50 }
 0x189   : > { %v589_v5 = vsel %vm557_vm15, %v532_v3, %v573_v4 }
 0x18a   : > { %663 = vmatmul.f32.gmra.mxu2 %v589_v5 }
 0x1b5   : > { %v631_v48 = vpop.f32.mrf.mxu2 }
 0x1b6   : > { %v632_v7 = vadd.f32 %v820_v6, %v631_v48 }
 0x1b8   : > { %679 = vst [vmem:[%s1139_s16] sm:$0xff] %v632_v7 }
 0x1bd   : > { %v634_v50 = vpop.f32.mrf.mxu2 }
 0x1be   : > { %v635_v8 = vadd.f32 %v820_v6, %v634_v50 }
 0x1c0   : > { %680 = vst [vmem:[%s1139_s16 + $0x8] sm:$0xff] %v635_v8 }
 0x1c1   : > { %v667_v13 = vpop.f32.mrf.mxu3 }
 0x1c2   : > { %v668_v14 = vadd.f32 %v820_v6, %v667_v13 }
 0x1c4   : > { %691 = vst [vmem:[%s1139_s16 + $0x60] sm:$0xff] %v668_v14 }
 0x1c5   : > { %v637_v9 = vpop.f32.mrf.mxu2 }
 0x1c6   : > { %v638_v10 = vadd.f32 %v820_v6, %v637_v9 }
 0x1c8   : > { %681 = vst [vmem:[%s1139_s16 + $0x10] sm:$0xff] %v638_v10 }
 0x1c9   : > { %v670_v17 = vpop.f32.mrf.mxu3 }
 0x1ca   : > { %v671_v18 = vadd.f32 %v820_v6, %v670_v17 }
 0x1cc   : > { %692 = vst [vmem:[%s1139_s16 + $0x68] sm:$0xff] %v671_v18 }
 0x1cd   : > { %v640_v11 = vpop.f32.mrf.mxu2 }
 0x1ce   : > { %v641_v12 = vadd.f32 %v820_v6, %v640_v11 }
 0x1d0   : > { %682 = vst [vmem:[%s1139_s16 + $0x18] sm:$0xff] %v641_v12 }
 0x1d1   : > { %v673_v21 = vpop.f32.mrf.mxu3 }
 0x1d2   : > { %v674_v22 = vadd.f32 %v820_v6, %v673_v21 }
 0x1d4   : > { %693 = vst [vmem:[%s1139_s16 + $0x70] sm:$0xff] %v674_v22 }
 0x1d5   : > { %v643_v15 = vpop.f32.mrf.mxu2 }
 0x1d6   : > { %v644_v16 = vadd.f32 %v820_v6, %v643_v15 }
 0x1d8   : > { %683 = vst [vmem:[%s1139_s16 + $0x20] sm:$0xff] %v644_v16 }
 0x1d9   : > { %v676_v25 = vpop.f32.mrf.mxu3 }
 0x1da   : > { %v677_v26 = vadd.f32 %v820_v6, %v676_v25 }
 0x1dc   : > { %694 = vst [vmem:[%s1139_s16 + $0x78] sm:$0xff] %v677_v26 }
 0x1dd   : > { %v646_v19 = vpop.f32.mrf.mxu2 }
 0x1de   : > { %v647_v20 = vadd.f32 %v820_v6, %v646_v19 }
 0x1e0   : > { %684 = vst [vmem:[%s1139_s16 + $0x28] sm:$0xff] %v647_v20 }
 0x1e5   : > { %v649_v23 = vpop.f32.mrf.mxu2 }
 0x1e6   : > { %v650_v24 = vadd.f32 %v820_v6, %v649_v23 }
 0x1e8   : > { %685 = vst [vmem:[%s1139_s16 + $0x30] sm:$0xff] %v650_v24 }
 0x1ed   : > { %v652_v27 = vpop.f32.mrf.mxu2 }
 0x1ee   : > { %v653_v28 = vadd.f32 %v820_v6, %v652_v27 }
 0x1f0   : > { %686 = vst [vmem:[%s1139_s16 + $0x38] sm:$0xff] %v653_v28 }
 0x1f5   : > { %v655_v29 = vpop.f32.mrf.mxu2 }
 0x1f6   : > { %v656_v30 = vadd.f32 %v820_v6, %v655_v29 }
 0x1f8   : > { %687 = vst [vmem:[%s1139_s16 + $0x40] sm:$0xff] %v656_v30 }
 0x1fd   : > { %v658_v31 = vpop.f32.mrf.mxu2 }
 0x1fe   : > { %v659_v32 = vadd.f32 %v820_v6, %v658_v31 }
 0x200   : > { %688 = vst [vmem:[%s1139_s16 + $0x48] sm:$0xff] %v659_v32 }
 0x205   : > { %v661_v33 = vpop.f32.mrf.mxu2 }
 0x206   : > { %v662_v34 = vadd.f32 %v820_v6, %v661_v33 }
 0x208   : > { %689 = vst [vmem:[%s1139_s16 + $0x50] sm:$0xff] %v662_v34 }
 0x20d   : > { %v664_v35 = vpop.f32.mrf.mxu2 }
 0x20e   : > { %v665_v36 = vadd.f32 %v820_v6, %v664_v35 }
 0x210   : > { %690 = vst [vmem:[%s1139_s16 + $0x58] sm:$0xff] %v665_v36 }
 0x211 PF: > { %s19_s29 = sadd.s32 1, %s827_s29  }
 0x212   : > { %p16_p4 = scmp.ge.s32.totalorder %s19_s29, 4  }
 0x214   :  { %18 = sbr.rel (!%p16_p4) target bundleno = 2 (0x2), region = 82 }

</bundles_post_ra>
